<compile_context>
chip_gen: v7x
topology: tpu7x:2x2x1
jax: 0.10.0
libtpu: 0.0.40
codegen_flags: <defaults>
</compile_context>

<pallas_src>
import functools

import jax
import jax.numpy as jnp
import numpy as np
from jax import lax
from jax.experimental import pallas as pl
from jax.experimental.pallas import tpu as pltpu


def _round_up(x, m):
    return (x + m - 1) // m * m


def _srl16(v):
    # Logical right-shift-by-16 for int32 (arithmetic shift + mask).
    return (v >> 16) & jnp.int32(0xFFFF)


def _lora_kernel(seed_ref, x_ref, a_ref, b_ref, o_ref, *,
                 scale, dropout_p, training, tm, in_features):
    """One (tm, tn) output tile of dropout(x) @ A @ B * scale."""
    x = x_ref[...]                      # native dtype (f32 or bf16)

    if training and dropout_p > 0.0:
        # Inverted dropout.  The 1/(1-p) factor is folded into `scale`; here
        # we only zero dropped elements.  Keep-mask = stateless hash of
        # (seed, global element index): identical for every tile shape and
        # for every out-feature block j, reproducible on the host.
        # TODO(synk): not bit-identical to torch's RNG stream.
        seed = seed_ref[0]
        row = (lax.broadcasted_iota(jnp.int32, x.shape, 0)
               + pl.program_id(0) * tm)
        col = lax.broadcasted_iota(jnp.int32, x.shape, 1)
        v = row * jnp.int32(in_features) + col   # int32 wrap is fine for hashing
        v = v ^ (seed * jnp.int32(0x27D4EB2F))
        v = (_srl16(v) ^ v) * jnp.int32(0x045D9F3B)
        v = (_srl16(v) ^ v) * jnp.int32(0x045D9F3B)
        v = _srl16(v) ^ v
        r = v & jnp.int32(0x7FFFFFFF)            # uniform in [0, 2^31)
        thr = jnp.int32(min(int(round(dropout_p * float(1 << 31))),
                            (1 << 31) - 1))
        x = jnp.where(r >= thr, x, jnp.zeros_like(x))

    # (tm, in) @ (in, rank_p) -> f32 (tm, rank_p) on the MXU.
    xa = jnp.dot(x, a_ref[...], preferred_element_type=jnp.float32)
    # Scale the small (tm, rank_p) intermediate instead of the (tm, tn) y.
    xa = (xa * scale).astype(b_ref.dtype)
    # (tm, rank_p) @ (rank_p, tn) -> f32 (tm, tn).
    y = jnp.dot(xa, b_ref[...], preferred_element_type=jnp.float32)
    o_ref[...] = y.astype(o_ref.dtype)


def _vmem_budget():
    """Return (vmem_limit_bytes, tiling_budget_bytes), generation aware."""
    limit = 46 * 1024 * 1024            # conservative default (v7x: 64 MiB)
    try:
        if jax.devices()[0].platform == "tpu":
            cap = pltpu.get_tpu_info().vmem_capacity_bytes
            if cap >= 128 * 1024 * 1024:      # v5e / v6e (128 MiB physical)
                limit = 100 * 1024 * 1024
            else:                             # v7x (64 MiB physical)
                limit = min(46 * 1024 * 1024, int(cap * 0.72))
    except Exception:                          # no TPU / old jax: keep default
        pass
    budget = int(limit * 0.8)                  # headroom for Mosaic scratch
    return limit, budget


def _choose_tiles(M, in_f, out_f, rank_p, itemsize, training, budget, limit):
    """Pick (tm, tn) row / out-column tiles that fit the VMEM budget."""
    tn = out_f if out_f <= 1024 else 1024

    # Resident weight blocks, double-buffered by the default pipeline.
    fixed = 2 * (in_f * rank_p + rank_p * tn) * itemsize

    # Per-row VMEM: double-buffered x and out tiles plus in-kernel
    # temporaries (f32 xa + its cast copy, the f32 dot result before the
    # output cast, and in training the int32 hash tile + masked x copy).
    per_row = (2 * in_f * itemsize            # x (double-buffered)
               + 2 * tn * itemsize            # out (double-buffered)
               + rank_p * (4 + itemsize)      # f32 xa + cast copy
               + tn * 4)                      # f32 y before cast
    if training:
        per_row += in_f * (4 + itemsize)      # hash bits + masked x

    min_rows = min(M, 128) if M > 0 else 1
    if fixed + min_rows * per_row > limit:
        raise ValueError(
            "LoRA tiles do not fit in VMEM even at the minimum row tile: "
            f"need {fixed + min_rows * per_row} bytes, limit {limit} bytes.")

    if M < 128:
        return M, tn                     # one partial row block (full dim ok)

    tm = (budget - fixed) // per_row
    tm = max(128, min(1024, (tm // 128) * 128))
    tm = min(tm, (M // 128) * 128)       # never exceed the array extent
    if M >= 256:
        # Keep >= 2 row blocks so both v7x TensorCores get work.
        tm = min(tm, _round_up(-(-M // 2), 128))
    return tm, tn


def lora_forward(x, lora_A, lora_B, *, alpha=1.0, dropout_p=0.1,
                 training=False, seed=0, tm=None, tn=None):
    """Pallas LoRA forward.  x: (..., in_features) -> (..., out_features)."""
    in_features, rank = lora_A.shape
    rank_b, out_features = lora_B.shape
    assert rank_b == rank and x.shape[-1] == in_features
    scaling = alpha / rank
    if training and dropout_p > 0.0:
        scaling = scaling / (1.0 - dropout_p)   # inverted-dropout factor

    dtype = x.dtype
    lora_A = lora_A.astype(dtype)
    lora_B = lora_B.astype(dtype)

    # Pad rank to exactly one 128-lane tile (zero cols/rows -> exact result).
    rank_p = _round_up(rank, 128)
    if rank_p != rank:
        lora_A = jnp.pad(lora_A, ((0, 0), (0, rank_p - rank)))
        lora_B = jnp.pad(lora_B, ((0, rank_p - rank), (0, 0)))

    orig_lead = x.shape[:-1]
    x2 = x.reshape(-1, in_features)
    M = x2.shape[0]

    itemsize = jnp.dtype(dtype).itemsize
    limit, budget = _vmem_budget()
    tm_auto, tn_auto = _choose_tiles(M, in_features, out_features, rank_p,
                                     itemsize, training and dropout_p > 0.0,
                                     budget, limit)
    tm = tm_auto if tm is None else tm
    tn = tn_auto if tn is None else tn

    grid_m = -(-M // tm)                 # partial trailing blocks are masked
    grid_n = -(-out_features // tn)

    kernel = functools.partial(_lora_kernel, scale=scaling,
                               dropout_p=dropout_p, training=training,
                               tm=tm, in_features=in_features)
    seed_arr = jnp.array([seed], dtype=jnp.int32)

    cost = pl.CostEstimate(
        flops=2 * M * rank_p * (in_features + out_features),
        transcendentals=0,
        bytes_accessed=(M * (in_features + out_features)
                        + in_features * rank_p
                        + grid_m * rank_p * out_features) * itemsize,
    )

    out = pl.pallas_call(
        kernel,
        out_shape=jax.ShapeDtypeStruct((M, out_features), dtype),
        grid_spec=pltpu.PrefetchScalarGridSpec(
            num_scalar_prefetch=1,            # dropout seed lives in SMEM
            grid=(grid_m, grid_n),            # rows outer, out-cols inner
            in_specs=[
                # x block is constant across j -> fetched once per row block.
                pl.BlockSpec((tm, in_features), lambda i, j, sref: (i, 0)),
                pl.BlockSpec((in_features, rank_p), lambda i, j, sref: (0, 0)),
                pl.BlockSpec((rank_p, tn), lambda i, j, sref: (0, j)),
            ],
            out_specs=pl.BlockSpec((tm, tn), lambda i, j, sref: (i, j)),
        ),
        compiler_params=pltpu.CompilerParams(
            dimension_semantics=("parallel", "parallel"),
            vmem_limit_bytes=limit,
        ),
        cost_estimate=cost,
    )(seed_arr, x2, lora_A, lora_B)

    return out.reshape(orig_lead + (out_features,))


def _host_dropout_keep_mask(M, in_features, seed, dropout_p):
    """Host re-implementation of the in-kernel hash mask (testing only)."""
    mask32 = np.uint64(0xFFFFFFFF)
    idx = (np.arange(M, dtype=np.uint64)[:, None] * np.uint64(in_features)
           + np.arange(in_features, dtype=np.uint64)[None, :]) & mask32
    v = idx ^ np.uint64((seed * 0x27D4EB2F) & 0xFFFFFFFF)
    for _ in range(2):
        v = ((v ^ (v >> np.uint64(16))) * np.uint64(0x045D9F3B)) & mask32
    v = v ^ (v >> np.uint64(16))
    r = v & np.uint64(0x7FFFFFFF)
    thr = np.uint64(min(int(round(dropout_p * float(1 << 31))), (1 << 31) - 1))
    return r >= thr


if __name__ == "__main__":
    # Small shapes consistent with the module: batch=2, seq=8, hidden=32.
    batch, seq, in_features, out_features, rank = 2, 8, 32, 32, 8
    alpha, dropout_p = 1.0, 0.1

    key = jax.random.PRNGKey(0)
    kx, ka, kb = jax.random.split(key, 3)

    x = jax.random.normal(kx, (batch, seq, in_features), dtype=jnp.float32)

    # Deterministic parameter init matching the PyTorch shapes.  lora_A uses
    # the kaiming_uniform_(a=sqrt(5)) bound; torch inits lora_B to zeros
    # (output identically 0), so use a small deterministic init to keep the
    # check non-trivial.
    bound = float(np.sqrt(2.0 / (1.0 + 5.0)) * np.sqrt(3.0 / rank))
    lora_A = jax.random.uniform(ka, (in_features, rank), dtype=jnp.float32,
                                minval=-bound, maxval=bound)
    lora_B = 0.02 * jax.random.normal(kb, (rank, out_features),
                                      dtype=jnp.float32)

    scaling = alpha / rank

    # --- eval mode, f32 (dropout is identity, matching module.eval()) ------
    y = lora_forward(x, lora_A, lora_B, alpha=alpha, dropout_p=dropout_p,
                     training=False)
    y = jax.block_until_ready(y)
    y_ref = (x.reshape(-1, in_features) @ lora_A @ lora_B * scaling
             ).reshape(batch, seq, out_features)
    np.testing.assert_allclose(np.asarray(y), np.asarray(y_ref),
                               rtol=1e-5, atol=1e-5)

    # --- eval mode, bf16 operands (native MXU dtype, f32 accumulation) -----
    x_bf = x.astype(jnp.bfloat16)
    a_bf = lora_A.astype(jnp.bfloat16)
    b_bf = lora_B.astype(jnp.bfloat16)
    y_bf = lora_forward(x_bf, a_bf, b_bf, alpha=alpha, dropout_p=dropout_p,
                        training=False)
    y_bf = jax.block_until_ready(y_bf)
    y_bf_ref = (x_bf.astype(jnp.float32).reshape(-1, in_features)
                @ a_bf.astype(jnp.float32) @ b_bf.astype(jnp.float32)
                * scaling).reshape(batch, seq, out_features)
    np.testing.assert_allclose(np.asarray(y_bf, dtype=np.float32),
                               np.asarray(y_bf_ref), rtol=5e-2, atol=1e-3)

    # --- train mode (in-kernel inverted dropout, hash-based keep mask) -----
    seed = 1234
    y_tr = lora_forward(x, lora_A, lora_B, alpha=alpha, dropout_p=dropout_p,
                        training=True, seed=seed)
    y_tr = jax.block_until_ready(y_tr)
    keep = _host_dropout_keep_mask(batch * seq, in_features, seed, dropout_p)
    x_kept = x.reshape(-1, in_features) * jnp.asarray(keep, dtype=x.dtype)
    tr_scale = scaling / (1.0 - dropout_p)
    y_tr_ref = (((x_kept @ lora_A) * tr_scale) @ lora_B
                ).reshape(batch, seq, out_features)
    np.testing.assert_allclose(np.asarray(y_tr), np.asarray(y_tr_ref),
                               rtol=1e-4, atol=1e-5)
    assert np.all(np.isfinite(np.asarray(y_tr)))

    print("KERNEL_OK")
</pallas_src>

<mosaic_0001>
module attributes {stable_mosaic.version = 11 : i64} {
  func.func @_lora_kernel(%arg0: i32, %arg1: i32, %arg2: memref<1xi32, #tpu.memory_space<smem>>, %arg3: memref<16x32xf32, #tpu.memory_space<vmem>>, %arg4: memref<32x128xf32, #tpu.memory_space<vmem>>, %arg5: memref<128x32xf32, #tpu.memory_space<vmem>>, %arg6: memref<16x32xf32, #tpu.memory_space<vmem>>) attributes {dimension_semantics = [#tpu.dimension_semantics<parallel>, #tpu.dimension_semantics<parallel>], iteration_bounds = array<i64: 1, 1>, scalar_prefetch = 1 : i64, scratch_operands = 0 : i64, tpu.core_type = #tpu.core_type<tc>, window_params = [{transform_indices = @transform_0, window_bounds = array<i64: 16, 32>}, {pipeline_mode = #tpu.pipeline_mode<synchronous>, transform_indices = @transform_1, window_bounds = array<i64: 32, 128>}, {transform_indices = @transform_2, window_bounds = array<i64: 128, 32>}, {transform_indices = @transform_3, window_bounds = array<i64: 16, 32>}]} {
    %c0 = arith.constant 0 : index
    %c0_0 = arith.constant 0 : index
    %0 = vector.load %arg3[%c0, %c0_0] : memref<16x32xf32, #tpu.memory_space<vmem>>, vector<16x32xf32>
    %c0_1 = arith.constant 0 : index
    %c0_2 = arith.constant 0 : index
    %1 = vector.load %arg4[%c0_1, %c0_2] : memref<32x128xf32, #tpu.memory_space<vmem>>, vector<32x128xf32>
    %cst = arith.constant dense<0.000000e+00> : vector<16x128xf32>
    %2 = tpu.matmul %0, %1, %cst {dimension_numbers = #tpu.dot_dimension_numbers<[1], [0], [0], [1], [0, 0, 1, 1], [], []>} : vector<16x32xf32>, vector<32x128xf32>, vector<16x128xf32> -> vector<16x128xf32>
    %cst_3 = arith.constant 1.250000e-01 : f32
    %3 = vector.broadcast %cst_3 : f32 to vector<16x128xf32>
    %4 = arith.mulf %2, %3 : vector<16x128xf32>
    %c0_4 = arith.constant 0 : index
    %c0_5 = arith.constant 0 : index
    %5 = vector.load %arg5[%c0_4, %c0_5] : memref<128x32xf32, #tpu.memory_space<vmem>>, vector<128x32xf32>
    %cst_6 = arith.constant dense<0.000000e+00> : vector<16x32xf32>
    %6 = tpu.matmul %4, %5, %cst_6 {dimension_numbers = #tpu.dot_dimension_numbers<[1], [0], [0], [1], [0, 0, 1, 1], [], []>} : vector<16x128xf32>, vector<128x32xf32>, vector<16x32xf32> -> vector<16x32xf32>
    %c0_7 = arith.constant 0 : index
    %c0_8 = arith.constant 0 : index
    %7 = vector.load %arg6[%c0_7, %c0_8] : memref<16x32xf32, #tpu.memory_space<vmem>>, vector<16x32xf32>
    tpu.vector_store %arg6[%c0_7, %c0_8], %6 {strides = array<i32>} : memref<16x32xf32, #tpu.memory_space<vmem>>, vector<16x32xf32>,
    return
  }
  func.func @transform_0(%arg0: i32, %arg1: i32, %arg2: memref<1xi32, #tpu.memory_space<smem>>) -> (i32, i32) {
    %c0_i32 = arith.constant 0 : i32
    %c0_i32_0 = arith.constant 0 : i32
    return %arg0, %c0_i32 : i32, i32
  }
  func.func @transform_1(%arg0: i32, %arg1: i32, %arg2: memref<1xi32, #tpu.memory_space<smem>>) -> (i32, i32) {
    %c0_i32 = arith.constant 0 : i32
    %c0_i32_0 = arith.constant 0 : i32
    %c0_i32_1 = arith.constant 0 : i32
    return %c0_i32, %c0_i32_0 : i32, i32
  }
  func.func @transform_2(%arg0: i32, %arg1: i32, %arg2: memref<1xi32, #tpu.memory_space<smem>>) -> (i32, i32) {
    %c0_i32 = arith.constant 0 : i32
    %c0_i32_0 = arith.constant 0 : i32
    return %c0_i32, %arg1 : i32, i32
  }
  func.func @transform_3(%arg0: i32, %arg1: i32, %arg2: memref<1xi32, #tpu.memory_space<smem>>) -> (i32, i32) {
    %c0_i32 = arith.constant 0 : i32
    return %arg0, %arg1 : i32, i32
  }
}

</mosaic_0001>

<bundles_post_ra>
// kernel: tpu_custom_call.1
= control target key start
LH: loop header
LB: loop body
LE: loop exit
PB: predicated region body
PF: predicated region fallthrough
CT: control target
= control target key end

     0   :  { %vm23_vm0 = vcmask 261120   ;;  %s465_s0 = inlined_call_operand.<no memory space> [shape: s32[1], index: 0, kind: input, shape index: {}]   ;;  %s466_s1 = inlined_call_operand.vmem [shape: f32[16,32], index: 1, kind: input, shape index: {}]   ;;  %s467_s2 = inlined_call_operand.vmem [shape: f32[32,128], index: 2, kind: input, shape index: {}]   ;;  %s468_s3 = inlined_call_operand.vmem [shape: f32[128,32], index: 3, kind: input, shape index: {}]   ;;  %s469_s4 = inlined_call_operand.hbm [shape: f32[16,32], index: 4, kind: output, shape index: {}]  }
   0x1   :  { %v19_v0 = vld [vmem:[%s467_s2] sm:$0xff]  ;;  %v20_v1 = vld [vmem:[%s467_s2 + $0x8] sm:$0xff]  ;;  %v21_v2 = vld [vmem:[%s467_s2 + $0x10] sm:$0xff] }
   0x2   :  { %v288_v3 = vpack.c.bf16 %v20_v1, %v19_v0  ;;  %v22_v4 = vld [vmem:[%s467_s2 + $0x18] sm:$0xff]  ;;  %v17_v5 = vld [vmem:[%s466_s1] sm:$0xff]  ;;  %v108_v8 = vld [vmem:[%s468_s3 + $0x8] sm:$0xff] }
   0x3   :  { %v292_v6 = vpack.c.bf16 %v22_v4, %v21_v2  ;;  %250 = vmatprep.mubr.msk.f32.mxu0 %vm23_vm0, %v17_v5  ;;  %v107_v7 = vld [vmem:[%s468_s3] sm:$0xff]  ;;  %v109_v9 = vld [vmem:[%s468_s3 + $0x10] sm:$0xff]  ;;  %v110_v11 = vld [vmem:[%s468_s3 + $0x18] sm:$0xff] }
   0x4   :  { %289 = vmatprep.subr.bf16.mxu0 %v288_v3  ;;  %v296_v10 = vpack.c.bf16 %v108_v8, %v107_v7  ;;  %v300_v12 = vpack.c.bf16 %v110_v11, %v109_v9  ;;  %v111_v13 = vld [vmem:[%s468_s3 + $0x20] sm:$0xff]  ;;  %v112_v14 = vld [vmem:[%s468_s3 + $0x28] sm:$0xff] }
   0x5   :  { %291 = vmatpush3.bf16.msra.mxu0 %v288_v3 }
   0x6   :  { %293 = vmatprep.subr.bf16.mxu0 %v292_v6  ;;  %297 = vmatprep.subr.bf16.mxu1 %v296_v10 }
   0x7   :  { %299 = vmatpush3.bf16.msra.mxu1 %v296_v10 }
   0x8   :  { %10 = vsyncpa [#allocation5], 0  ;;  %301 = vmatprep.subr.bf16.mxu1 %v300_v12  ;;  %v304_v15 = vpack.c.bf16 %v112_v14, %v111_v13  ;;  %v18_v16 = vld [vmem:[%s466_s1 + $0x8] sm:$0xff]  ;;  %v113_v17 = vld [vmem:[%s468_s3 + $0x30] sm:$0xff]  ;;  %s355_s29 = smov [#allocation4]  }
   0x9   :  { %295 = vmatpush3.bf16.msra.mxu0 %v292_v6  ;;  %v114_v18 = vld [vmem:[%s468_s3 + $0x38] sm:$0xff]  ;;  %v115_v20 = vld [vmem:[%s468_s3 + $0x40] sm:$0xff]  ;;  %v116_v21 = vld [vmem:[%s468_s3 + $0x48] sm:$0xff]  ;;  %s205_s2 = sshll.u32 %s355_s29, 4  ;;  %s206_s2 = int_to_ptr.vmem [resolvable:$true] %s205_s2 }
   0xa   :  { %v308_v19 = vpack.c.bf16 %v114_v18, %v113_v17  ;;  %v312_v22 = vpack.c.bf16 %v116_v21, %v115_v20  ;;  %v117_v23 = vld [vmem:[%s468_s3 + $0x50] sm:$0xff]  ;;  %v118_v24 = vld [vmem:[%s468_s3 + $0x58] sm:$0xff]  ;;  %v119_v26 = vld [vmem:[%s468_s3 + $0x60] sm:$0xff]  ;;  %s331_s30 = scalar_lea.vmem %s206_s2, 256  ;;  %p336_p1 = scmp.lt.s32.totalorder %s206_s2, %s206_s2 }
   0xb   :  { %303 = vmatpush3.bf16.msra.mxu1 %v300_v12  ;;  %v316_v25 = vpack.c.bf16 %v118_v24, %v117_v23  ;;  %v120_v27 = vld [vmem:[%s468_s3 + $0x68] sm:$0xff]  ;;  %v121_v29 = vld [vmem:[%s468_s3 + $0x70] sm:$0xff]  ;;  %v122_v30 = vld [vmem:[%s468_s3 + $0x78] sm:$0xff]  ;;  %p332_p0 = scmp.ne.s32.totalorder %s206_s2, %s331_s30  ;;  %p337_p2 = scmp.lt.s32.totalorder %s331_s30, %s331_s30 }
   0xc   :  { %251 = vmatmul.mubr.msk.f32.vlgmr.msra.gmra.mrb[0].mxu0 %vm23_vm0, %v18_v16  ;;  %305 = vmatprep.subr.bf16.mxu1 %v304_v15  ;;  %v320_v28 = vpack.c.bf16 %v120_v27, %v119_v26  ;;  %v324_v31 = vpack.c.bf16 %v122_v30, %v121_v29 }
   0xd   :  { %p338_p3 = por %p337_p2, %p336_p1 }
   0xf   :  { %307 = vmatpush3.bf16.msra.mxu1 %v304_v15  ;;  %p339_p4 = pnand %p338_p3, %p332_p0 }
  0x10   :  { %309 = vmatprep.subr.bf16.mxu1 %v308_v19 }
  0x13   :  { %311 = vmatpush3.bf16.msra.mxu1 %v308_v19 }
  0x14   :  { %313 = vmatprep.subr.bf16.mxu1 %v312_v22 }
  0x17   :  { %315 = vmatpush3.bf16.msra.mxu1 %v312_v22 }
  0x18   :  { %317 = vmatprep.subr.bf16.mxu1 %v316_v25 }
  0x1b   :  { %319 = vmatpush3.bf16.msra.mxu1 %v316_v25 }
  0x1c   :  { %321 = vmatprep.subr.bf16.mxu1 %v320_v28 }
  0x1f   :  { %323 = vmatpush3.bf16.msra.mxu1 %v320_v28 }
  0x20   :  { %325 = vmatprep.subr.bf16.mxu1 %v324_v31 }
  0x23   :  { %327 = vmatpush3.bf16.msra.mxu1 %v324_v31 }
  0xdf   :  { %v252_v32 = vpop.f32.mrb[0].mxu0 }
  0xe0   :  { %v96_v33 = vpop.f32.mrb[1].mxu0  ;;  %v106_v35 = vmul.f32 0.125, %v252_v32 }
  0xe1   :  { %v105_v34 = vmul.f32 0.125, %v96_v33 }
  0xe3   :  { %285 = vmatprep.mubr.f32.mxu1 %v105_v34 }
  0xe4   :  { %286 = vmatmul.mubr.f32.vlgmr.msra.gmra.mrb[0].mxu1 %v106_v35 }
 0x1b7   :  { %v287_v36 = vpop.f32.mrb[0].mxu1 }
 0x1b8   :  { %199 = vst.msk [vmem:[#allocation4 + $0x8] sm:$0xff] %vm23_vm0, %v287_v36  ;;  %v189_v37 = vpop.f32.mrb[1].mxu1 }
 0x1b9   :  { %198 = vst.msk [vmem:[#allocation4] sm:$0xff] %vm23_vm0, %v189_v37 }
 0x1ba   :  { %342 = shalt.err (!%p339_p4)
}
 0x1bb   :  { %s343_s6 = scalar_lea.hbm %s469_s4, 256 }
 0x1bc   :  { %p344_p5 = scmp.ne.s32.totalorder %s469_s4, %s343_s6  ;;  %p347_p6 = scmp.lt.u32.totalorder %s343_s6, %s469_s4 }
 0x1be   :  { %p349_p7 = pnand %p347_p6, %p344_p5 }
 0x1c0   :  { %352 = shalt.err (!%p349_p7)
}
 0x1c1   :  { %s356_s11 = smov 128   ;;  %s357_s12 = smov 8  }
 0x1c2   :  { %211 = dma.vmem_to_hbm [thread:$0]  %s206_s2, 256, %s469_s4, [#allocation5], %s356_s11, %s356_s11, %s357_s12  }
 0x1c3   :  { %353 = dma.done.wait [#allocation5], 256  }
 0x1c4   :  { %354 = vsyncadd [#allocation5], 4294967040 }
 0x1c5   :  { %215 = vsyncpa [#allocation5], 1 }

</bundles_post_ra>
